<compile_context>
chip_gen: v7x
topology: tpu7x:2x2x1
jax: 0.10.0
libtpu: 0.0.40
codegen_flags: <defaults>
</compile_context>

<pallas_src>
import functools

import jax
import jax.numpy as jnp
from jax.experimental import pallas as pl
from jax.experimental.pallas import tpu as pltpu


def _round_up(x, m):
    return ((x + m - 1) // m) * m


def _proj_norm_kernel(x_ref, w_ref, b_ref, g_ref, beta_ref, o_ref, *,
                      cross_dim, tokens_per_step):
    # x_ref:    (tm, d_in)        w_ref: (d_in, tn)   [streamed column chunk]
    # b_ref:    (1, tn)           g_ref/beta_ref: (1, C)
    # o_ref:    (tm, tn)          LayerNorm over each C-wide token slab.
    x = x_ref[...]
    if x.dtype != w_ref.dtype:
        x = x.astype(w_ref.dtype)          # supports bf16 weight streaming

    # Hoisted casts (JAX does not CSE repeated casts inside the unrolled loop).
    bias = b_ref[...].astype(jnp.float32)      # (1, tn)
    gamma = g_ref[...].astype(jnp.float32)     # (1, C)
    beta = beta_ref[...].astype(jnp.float32)   # (1, C)
    inv_c = 1.0 / float(cross_dim)

    # One MXU matmul for the whole column chunk, f32 accumulation.
    y_all = jnp.dot(x, w_ref[...], preferred_element_type=jnp.float32) + bias

    # tokens_per_step is tiny (default 1) -> static unroll; every slice is a
    # static, 128-lane-aligned slab -> unmasked stores.
    for t in range(tokens_per_step):
        lo = t * cross_dim
        y = y_all[:, lo:lo + cross_dim]
        # Fused single-pass statistics: var = E[y^2] - E[y]^2 (biased, torch).
        s1 = jnp.sum(y, axis=-1, keepdims=True)
        s2 = jnp.sum(y * y, axis=-1, keepdims=True)
        mean = s1 * inv_c
        var = s2 * inv_c - mean * mean
        yn = (y - mean) * jax.lax.rsqrt(var + 1e-5)   # torch LayerNorm eps
        o_ref[:, lo:lo + cross_dim] = (yn * gamma + beta).astype(o_ref.dtype)


def image_proj_model(image_embeds, w, b, gamma, beta, *,
                     num_tokens, cross_dim, tm=None, tokens_per_step=1,
                     out_dtype=None):
    """
    image_embeds: (B, D_in)
    w:            (D_in, num_tokens * cross_dim)  (transposed torch Linear.weight;
                                                   f32 or bf16)
    b:            (num_tokens * cross_dim,)
    gamma, beta:  (cross_dim,)
    returns:      (B, num_tokens, cross_dim)
    """
    B, d_in = image_embeds.shape
    n_out = num_tokens * cross_dim
    assert w.shape == (d_in, n_out), (w.shape, (d_in, n_out))
    # Lane-aligned stores / MXU-friendly N dim; fail loudly rather than emit
    # masked vst.msk partial stores.
    assert cross_dim % 128 == 0, "cross_attention_dim must be a multiple of 128"
    assert num_tokens % tokens_per_step == 0

    if out_dtype is None:
        out_dtype = image_embeds.dtype

    # Batch tile: multiple of 8, grown toward 256 (fills v6e/v7x 256-wide MXU M
    # dim when B is large); pad B so B=1 / odd batches work.
    if tm is None:
        tm = min(256, _round_up(max(B, 1), 8))
    tm = max(8, _round_up(tm, 8))
    b_pad = _round_up(B, tm)
    x = image_embeds
    if b_pad != B:
        x = jnp.pad(x, ((0, b_pad - B), (0, 0)))

    tn = tokens_per_step * cross_dim          # W column-chunk width
    n_col = n_out // tn
    grid = (n_col, b_pad // tm)               # batch axis INNERMOST

    b2 = b.reshape(1, n_out)
    g2 = gamma.reshape(1, cross_dim)
    beta2 = beta.reshape(1, cross_dim)

    # VMEM: double-buffered streamed W chunk + x/out tiles + small params.
    x_it = jnp.dtype(x.dtype).itemsize
    w_it = jnp.dtype(w.dtype).itemsize
    o_it = jnp.dtype(out_dtype).itemsize
    est = (2 * d_in * tn * w_it               # W chunk (double buffered)
           + 2 * tm * d_in * x_it             # x tile
           + 2 * tm * tn * o_it               # out tile
           + 2 * tn * jnp.dtype(b.dtype).itemsize
           + 4 * cross_dim * 4)               # gamma/beta
    try:
        cap = int(getattr(pltpu.get_tpu_info(), "vmem_capacity_bytes", 64 << 20))
    except Exception:
        cap = 64 << 20                        # conservative (v7x per-TC VMEM)
    vmem_limit = int(min(max(2 * est, 32 << 20), cap * 3 // 4))

    kernel = functools.partial(_proj_norm_kernel,
                               cross_dim=cross_dim,
                               tokens_per_step=tokens_per_step)

    out2d = pl.pallas_call(
        kernel,
        out_shape=jax.ShapeDtypeStruct((b_pad, n_out), out_dtype),
        grid_spec=pltpu.PrefetchScalarGridSpec(
            num_scalar_prefetch=0,
            grid=grid,
            in_specs=[
                # x: one batch tile per inner step (reused across column steps).
                pl.BlockSpec((tm, d_in), lambda n, i: (i, 0)),
                # W: streamed column chunks; block index depends only on the
                # OUTER column axis, so each chunk is DMA'd exactly once and the
                # next chunk's DMA overlaps this chunk's matmul.
                pl.BlockSpec((d_in, tn), lambda n, i: (0, n)),
                # bias chunk follows W's column chunk.
                pl.BlockSpec((1, tn), lambda n, i: (0, n)),
                # gamma / beta: tiny resident blocks.
                pl.BlockSpec((1, cross_dim), lambda n, i: (0, 0)),
                pl.BlockSpec((1, cross_dim), lambda n, i: (0, 0)),
            ],
            # Lane-dense 2-D output slab; (B, T, C) reshape happens outside.
            out_specs=pl.BlockSpec((tm, tn), lambda n, i: (i, n)),
        ),
        compiler_params=pltpu.CompilerParams(
            # Both axes independent -> column axis shards across the two v7x
            # TensorCores even at B=1; batch axis shards when B is large.
            dimension_semantics=("parallel", "parallel"),
            vmem_limit_bytes=vmem_limit,
        ),
    )(x, w, b2, g2, beta2)

    out2d = out2d[:B] if b_pad != B else out2d
    return out2d.reshape(B, num_tokens, cross_dim)


def reference(image_embeds, w, b, gamma, beta, *, num_tokens, cross_dim):
    y = jnp.dot(image_embeds, w, precision=jax.lax.Precision.HIGHEST) + b
    y = y.reshape(-1, num_tokens, cross_dim)
    mean = jnp.mean(y, axis=-1, keepdims=True)
    var = jnp.mean((y - mean) ** 2, axis=-1, keepdims=True)
    return (y - mean) * jax.lax.rsqrt(var + 1e-5) * gamma + beta


if __name__ == "__main__":
    # Small shapes consistent with the module (scaled-down dims).
    B = 2                       # not a multiple of 8 -> exercises batch padding
    clip_embeddings_dim = 256   # D_in
    cross_attention_dim = 256   # C (multiple of 128)
    clip_extra_context_tokens = 4

    key = jax.random.PRNGKey(0)
    k_x, k_w, k_b, k_g, k_beta = jax.random.split(key, 5)

    image_embeds = jax.random.normal(k_x, (B, clip_embeddings_dim), jnp.float32)
    # torch Linear weight is (out, in); we store W^T = (in, out).
    w = jax.random.normal(
        k_w, (clip_embeddings_dim, clip_extra_context_tokens * cross_attention_dim),
        jnp.float32) * 0.02
    b = jax.random.normal(
        k_b, (clip_extra_context_tokens * cross_attention_dim,), jnp.float32) * 0.01
    gamma = 1.0 + 0.1 * jax.random.normal(k_g, (cross_attention_dim,), jnp.float32)
    beta = 0.1 * jax.random.normal(k_beta, (cross_attention_dim,), jnp.float32)

    out = image_proj_model(
        image_embeds, w, b, gamma, beta,
        num_tokens=clip_extra_context_tokens, cross_dim=cross_attention_dim)
    out = jax.block_until_ready(out)

    ref = reference(
        image_embeds, w, b, gamma, beta,
        num_tokens=clip_extra_context_tokens, cross_dim=cross_attention_dim)

    assert out.shape == (B, clip_extra_context_tokens, cross_attention_dim)
    assert jnp.allclose(out, ref, atol=2e-3, rtol=2e-3), float(
        jnp.max(jnp.abs(out - ref)))
    print("KERNEL_OK")
</pallas_src>

<mosaic_0001>
module attributes {stable_mosaic.version = 11 : i64} {
  func.func @_proj_norm_kernel(%arg0: i32, %arg1: i32, %arg2: memref<8x256xf32, #tpu.memory_space<vmem>>, %arg3: memref<256x256xf32, #tpu.memory_space<vmem>>, %arg4: memref<1x256xf32, #tpu.memory_space<vmem>>, %arg5: memref<1x256xf32, #tpu.memory_space<vmem>>, %arg6: memref<1x256xf32, #tpu.memory_space<vmem>>, %arg7: memref<8x256xf32, #tpu.memory_space<vmem>>) attributes {dimension_semantics = [#tpu.dimension_semantics<parallel>, #tpu.dimension_semantics<parallel>], iteration_bounds = array<i64: 4, 1>, scalar_prefetch = 0 : i64, scratch_operands = 0 : i64, tpu.core_type = #tpu.core_type<tc>, window_params = [{transform_indices = @transform_0, window_bounds = array<i64: 8, 256>}, {transform_indices = @transform_1, window_bounds = array<i64: 256, 256>}, {transform_indices = @transform_2, window_bounds = array<i64: 1, 256>}, {pipeline_mode = #tpu.pipeline_mode<synchronous>, transform_indices = @transform_3, window_bounds = array<i64: 1, 256>}, {pipeline_mode = #tpu.pipeline_mode<synchronous>, transform_indices = @transform_4, window_bounds = array<i64: 1, 256>}, {transform_indices = @transform_5, window_bounds = array<i64: 8, 256>}]} {
    %c0 = arith.constant 0 : index
    %c0_0 = arith.constant 0 : index
    %0 = vector.load %arg2[%c0, %c0_0] : memref<8x256xf32, #tpu.memory_space<vmem>>, vector<8x256xf32>
    %c0_1 = arith.constant 0 : index
    %c0_2 = arith.constant 0 : index
    %1 = vector.load %arg4[%c0_1, %c0_2] : memref<1x256xf32, #tpu.memory_space<vmem>>, vector<1x256xf32>
    %c0_3 = arith.constant 0 : index
    %c0_4 = arith.constant 0 : index
    %2 = vector.load %arg5[%c0_3, %c0_4] : memref<1x256xf32, #tpu.memory_space<vmem>>, vector<1x256xf32>
    %c0_5 = arith.constant 0 : index
    %c0_6 = arith.constant 0 : index
    %3 = vector.load %arg6[%c0_5, %c0_6] : memref<1x256xf32, #tpu.memory_space<vmem>>, vector<1x256xf32>
    %c0_7 = arith.constant 0 : index
    %c0_8 = arith.constant 0 : index
    %4 = vector.load %arg3[%c0_7, %c0_8] : memref<256x256xf32, #tpu.memory_space<vmem>>, vector<256x256xf32>
    %cst = arith.constant dense<0.000000e+00> : vector<8x256xf32>
    %5 = tpu.matmul %0, %4, %cst {dimension_numbers = #tpu.dot_dimension_numbers<[1], [0], [0], [1], [0, 0, 1, 1], [], []>} : vector<8x256xf32>, vector<256x256xf32>, vector<8x256xf32> -> vector<8x256xf32>
    %6 = vector.broadcast %1 : vector<1x256xf32> to vector<8x256xf32>
    %7 = arith.addf %5, %6 : vector<8x256xf32>
    %cst_9 = arith.constant dense<0.000000e+00> : vector<8xf32>
    %8 = vector.multi_reduction <add>, %7, %cst_9 [1] : vector<8x256xf32> to vector<8xf32>
    %9 = vector.shape_cast %8 : vector<8xf32> to vector<8x1xf32>
    %10 = arith.mulf %7, %7 : vector<8x256xf32>
    %cst_10 = arith.constant dense<0.000000e+00> : vector<8xf32>
    %11 = vector.multi_reduction <add>, %10, %cst_10 [1] : vector<8x256xf32> to vector<8xf32>
    %12 = vector.shape_cast %11 : vector<8xf32> to vector<8x1xf32>
    %cst_11 = arith.constant 3.906250e-03 : f32
    %13 = vector.broadcast %cst_11 : f32 to vector<8x1xf32>
    %14 = arith.mulf %9, %13 : vector<8x1xf32>
    %cst_12 = arith.constant 3.906250e-03 : f32
    %15 = vector.broadcast %cst_12 : f32 to vector<8x1xf32>
    %16 = arith.mulf %12, %15 : vector<8x1xf32>
    %17 = arith.mulf %14, %14 : vector<8x1xf32>
    %18 = arith.subf %16, %17 : vector<8x1xf32>
    %19 = vector.broadcast %14 : vector<8x1xf32> to vector<8x256xf32>
    %20 = arith.subf %7, %19 : vector<8x256xf32>
    %cst_13 = arith.constant 9.99999974E-6 : f32
    %21 = vector.broadcast %cst_13 : f32 to vector<8x1xf32>
    %22 = arith.addf %18, %21 : vector<8x1xf32>
    %23 = math.rsqrt %22 : vector<8x1xf32>
    %24 = vector.broadcast %23 : vector<8x1xf32> to vector<8x256xf32>
    %25 = arith.mulf %20, %24 : vector<8x256xf32>
    %26 = vector.broadcast %2 : vector<1x256xf32> to vector<8x256xf32>
    %27 = arith.mulf %25, %26 : vector<8x256xf32>
    %28 = vector.broadcast %3 : vector<1x256xf32> to vector<8x256xf32>
    %29 = arith.addf %27, %28 : vector<8x256xf32>
    %c0_14 = arith.constant 0 : index
    %c0_15 = arith.constant 0 : index
    %30 = vector.load %arg7[%c0_14, %c0_15] : memref<8x256xf32, #tpu.memory_space<vmem>>, vector<8x256xf32>
    tpu.vector_store %arg7[%c0_14, %c0_15], %29 {strides = array<i32>} : memref<8x256xf32, #tpu.memory_space<vmem>>, vector<8x256xf32>,
    return
  }
  func.func @transform_0(%arg0: i32, %arg1: i32) -> (i32, i32) {
    %c0_i32 = arith.constant 0 : i32
    %c0_i32_0 = arith.constant 0 : i32
    return %arg1, %c0_i32 : i32, i32
  }
  func.func @transform_1(%arg0: i32, %arg1: i32) -> (i32, i32) {
    %c0_i32 = arith.constant 0 : i32
    %c0_i32_0 = arith.constant 0 : i32
    return %c0_i32, %arg0 : i32, i32
  }
  func.func @transform_2(%arg0: i32, %arg1: i32) -> (i32, i32) {
    %c0_i32 = arith.constant 0 : i32
    %c0_i32_0 = arith.constant 0 : i32
    return %c0_i32, %arg0 : i32, i32
  }
  func.func @transform_3(%arg0: i32, %arg1: i32) -> (i32, i32) {
    %c0_i32 = arith.constant 0 : i32
    %c0_i32_0 = arith.constant 0 : i32
    %c0_i32_1 = arith.constant 0 : i32
    return %c0_i32, %c0_i32_0 : i32, i32
  }
  func.func @transform_4(%arg0: i32, %arg1: i32) -> (i32, i32) {
    %c0_i32 = arith.constant 0 : i32
    %c0_i32_0 = arith.constant 0 : i32
    %c0_i32_1 = arith.constant 0 : i32
    return %c0_i32, %c0_i32_0 : i32, i32
  }
  func.func @transform_5(%arg0: i32, %arg1: i32) -> (i32, i32) {
    %c0_i32 = arith.constant 0 : i32
    return %arg1, %arg0 : i32, i32
  }
}

</mosaic_0001>

<bundles_post_ra>
// kernel: tpu_custom_call.1
= control target key start
LH: loop header
LB: loop body
LE: loop exit
PB: predicated region body
PF: predicated region fallthrough
CT: control target
= control target key end

     0   :  { %s1350_s0 = inlined_call_operand.hbm [shape: f32[8,256], index: 0, kind: input, shape index: {}]   ;;  %s1351_s1 = inlined_call_operand.hbm [shape: f32[256,1024], index: 1, kind: input, shape index: {}]   ;;  %s1352_s2 = inlined_call_operand.hbm [shape: f32[1,1024], index: 2, kind: input, shape index: {}]   ;;  %s1353_s3 = inlined_call_operand.vmem [shape: f32[1,256], index: 3, kind: input, shape index: {}]   ;;  %s1354_s4 = inlined_call_operand.vmem [shape: f32[1,256], index: 4, kind: input, shape index: {}]   ;;  %s1355_s5 = inlined_call_operand.hbm [shape: f32[8,1024], index: 5, kind: output, shape index: {}]  }
   0x1   :  { %1362 = sst [smem:[#allocation13_spill]] %s1351_s1 }
   0x2   :  { %1363 = sst [smem:[#allocation14_spill]] %s1352_s2 }
   0x3   :  { %10 = vsyncpa [#allocation3], 0 }
   0x4   :  { %11 = vsyncpa [#allocation6], 0 }
   0x5   :  { %13 = vsyncpa [#allocation6 + $0x1], 0 }
   0x6   :  { %14 = vsyncpa [#allocation4], 0 }
   0x7   :  { %16 = vsyncpa [#allocation4 + $0x1], 0  ;;  %s1029_s18 = smov 0   ;;  %s1031_s19 = smov 0  }
   0x8   :  { %s1033_s20 = smov 0   ;;  %s1035_s21 = smov 0  }
   0x9   :  { %s1037_s22 = smov 0   ;;  %s1039_s23 = smov 0  }
   0xa LB: > { %s34_s24 = sadd.s32 1, %s986_s22  ;;  %s67_s25 = sadd.s32 1, %s978_s20  ;;  %s990_s23 = sphi %s1039_s23, %s22_s23   ;;  %s986_s22 = sphi %s1037_s22, %s1385_s22   ;;  %s982_s21 = sphi %s1035_s21, %s1384_s21   ;;  %s978_s20 = sphi %s1033_s20, %s1383_s20   ;;  %s974_s19 = sphi %s1031_s19, %s1382_s19   ;;  %s970_s18 = sphi %s1029_s18, %s1381_s18  }
   0xb   : > { %p36_p0 = scmp.ge.s32.totalorder %s34_s24, 4  ;;  %p74_p1 = scmp.ne.s32.totalorder %s978_s20, %s974_s19 }
   0xc   : > { %p75_p2 = scmp.eq.s32.totalorder %s990_s23, 0  ;;  %p759_p4 = scmp.lt.s32.totalorder %s990_s23, 4 }
   0xd   : > { %s1387_s24 = smov (%p36_p0, %s34_s24), 0  ;;  %s220_s27 = sand.u32 1, %s990_s23  }
   0xe   : > { %1364 = sst [smem:[#allocation12_spill]] %s1387_s24  ;;  %p76_p3 = por %p75_p2, %p74_p1 }
   0xf   : > { %s64_s26 = ssub.s32 %s986_s22, %s1387_s24  ;;  %s222_s28 = sand.u32 1, %s978_s20  }
  0x10   : > { %p65_p5 = scmp.eq.s32.totalorder %s64_s26, 0  ;;  %s666_s29 = sshll.u32 %s986_s22, 8 }
  0x11   : > { %s650_s6 = sshll.u32 %s222_s28, 9  ;;  %s1365_s1 = sld [smem:[#allocation13_spill]] }
  0x12   : > { %s1076_s30 = scalar_select %p65_p5, %s978_s20, %s67_s25  }
  0x13   : > { %p1085_p6 = pnand %p759_p4, %p76_p3  ;;  %s224_s11 = scalar_lea.vmem [#allocation5], %s650_s6 }
  0x14   : > { %s231_s12 = sshll.u32 %s224_s11, 4  ;;  %s1091_s13 = scalar_lea.sflag [#allocation6], %s220_s27  ;;  %s1089_s12 = int_to_ptr.vmem [resolvable:$true] %s231_s12 }
  0x15   : > { %p818_p8 = pneg %p1085_p6 }
  0x17   : > { %s1083_s9 = scalar_lea.hbm %s1365_s1, %s666_s29  ;;  %s821_s17 = scalar_lea.hbm %s1365_s1, 32768 }
  0x18   : > { %s816_s14 = scalar_lea.hbm %s1083_s9, 8192  ;;  %p822_p11 = scmp.lt.u32.totalorder %s1083_s9, %s1365_s1 }
  0x19   : > { %p817_p7 = scmp.ne.s32.totalorder %s1083_s9, %s816_s14  ;;  %p823_p12 = scmp.lt.u32.totalorder %s821_s17, %s816_s14 }
  0x1a   : > { %p825_p0 = scmp.lt.u32.totalorder %s816_s14, %s1083_s9 }
  0x1b   : > { %p819_p9 = pnand %p818_p8, %p817_p7  ;;  %p824_p13 = por %p823_p12, %p822_p11 }
  0x1d   : > { %p820_p10 = pneg %p819_p9  ;;  %p826_p2 = por %p825_p0, %p824_p13 }
  0x1f   : > { %p827_p3 = pnand %p826_p2, %p820_p10 }
  0x21   : > { %830 = shalt.err (!%p827_p3)
}
  0x22   : > { %s831_s27 = scalar_lea.vmem %s1089_s12, 8192  ;;  %s992_s29 = smov [#allocation5]  }
  0x23   : > { %p832_p4 = scmp.ne.s32.totalorder %s1089_s12, %s831_s27  ;;  %s836_s6 = sshll.u32 %s992_s29, 4  ;;  %s837_s6 = int_to_ptr.vmem [resolvable:$false] %s836_s6 }
  0x24   : > { %s838_s7 = scalar_lea.vmem %s837_s6, 16384  ;;  %p839_p9 = scmp.lt.s32.totalorder %s1089_s12, %s837_s6 }
  0x25   : > { %p834_p5 = pnand %p832_p4, %p818_p8  ;;  %p840_p11 = scmp.lt.s32.totalorder %s838_s7, %s831_s27 }
  0x27   : > { %p835_p7 = pneg %p834_p5  ;;  %p841_p12 = por %p840_p11, %p839_p9 }
  0x29   : > { %p842_p13 = pnand %p841_p12, %p835_p7 }
  0x2b   : > { %845 = shalt.err (!%p842_p13)
}
  0x2c   : > { %s993_s8 = smov 1024   ;;  %s994_s11 = smov 256  }
  0x2d   : > { %s995_s14 = smov 16   ;;  %s1120_s15 = sadd.s32 4294967295, %s990_s23  }
  0x2e   : > { %750 = dma.hbm_to_vmem [thread:$0]  (!%p1085_p6), %s1083_s9, 8192, %s1089_s12, %s1091_s13, %s993_s8, %s994_s11, %s995_s14  }
  0x2f   : > { %s646_s16 = sadd.s32 4294967294, %s990_s23   ;;  %p80_p10 = scmp.ne.s32.totalorder %s974_s19, %s970_s18 }
  0x30   : > { %p1357_p0 = scmp.eq.s32.totalorder %s1120_s15, 0  ;;  %p174_p2 = scmp.eq.s32.totalorder %s1120_s15, 3 }
  0x31   : > { %p180_p3 = scmp.eq.s32.totalorder %s646_s16, 3  ;;  %p647_p5 = scmp.ge.s32.totalorder %s990_s23, 1 }
  0x32   : > { %p1129_p4 = por %p1357_p0, %p80_p10  ;;  %p1137_p7 = por %p174_p2, %p74_p1 }
  0x33   : > { %p1141_p9 = por %p180_p3, %p80_p10  ;;  %p187_p11 = scmp.lt.s32.totalorder %s990_s23, 5 }
  0x34   : > { %s1367_s17 = scalar_select %p1129_p4, 1, 0 }
  0x35   : > { %s1368_s9 = scalar_select %p1137_p7, 1, 0 }
  0x36   : > { %s1369_s12 = scalar_select %p1141_p9, 1, 0 }
  0x37   : > { %s653_s25 = sshll.u32 %s222_s28, 1  ;;  %p1148_p12 = pnand %p647_p5, %p187_p11 }
  0x38   : > { %s996_s27 = smov [#allocation2]   ;;  %s667_s6 = sshll.u32 %s986_s22, 5 }
  0x39   : > { %s1370_s26 = scalar_select %p1148_p12, 1, 0 }
  0x3a   : > { %s203_s29 = sshll.u32 %s996_s27, 4  ;;  %p743_p1 = pneg %p1148_p12  ;;  %s1152_s29 = int_to_ptr.vmem [resolvable:$true] %s203_s29 }
  0x3b   : > { %s1371_s2 = sld [smem:[#allocation14_spill]]  ;;  %s245_s28 = scalar_lea.vmem [#allocation7], %s653_s25 }
  0x3c   : > { %s253_s14 = sshll.u32 %s245_s28, 4  ;;  %p1164_p13 = pnand %p743_p1, %p1357_p0  ;;  %s254_s14 = int_to_ptr.vmem [resolvable:$true] %s253_s14 }
  0x3e   : > { %s1372_s16 = scalar_select %p1164_p13, 1, 0 }
  0x41   : > { %s1160_s11 = scalar_lea.hbm %s1371_s2, %s667_s6  ;;  %s851_s8 = scalar_lea.hbm %s1371_s2, 128 }
  0x42   : > { %s846_s27 = scalar_lea.hbm %s1160_s11, 32  ;;  %p852_p5 = scmp.lt.u32.totalorder %s1160_s11, %s1371_s2 }
  0x43   : > { %p847_p10 = scmp.ne.s32.totalorder %s1160_s11, %s846_s27  ;;  %p853_p11 = scmp.lt.u32.totalorder %s851_s8, %s846_s27 }
  0x44   : > { %p855_p0 = scmp.lt.u32.totalorder %s846_s27, %s1160_s11 }
  0x45   : > { %p849_p2 = pnand %p847_p10, %p818_p8  ;;  %p854_p1 = por %p853_p11, %p852_p5 }
  0x47   : > { %p850_p3 = pneg %p849_p2  ;;  %p856_p9 = por %p855_p0, %p854_p1 }
  0x49   : > { %p857_p7 = pnand %p856_p9, %p850_p3 }
  0x4b   : > { %860 = shalt.err (!%p857_p7)
}
  0x4c   : > { %s861_s25 = scalar_lea.vmem %s254_s14, 32  ;;  %s997_s28 = smov [#allocation7]  }
  0x4d   : > { %p862_p4 = scmp.ne.s32.totalorder %s254_s14, %s861_s25  ;;  %s866_s6 = sshll.u32 %s997_s28, 4  ;;  %s867_s6 = int_to_ptr.vmem [resolvable:$false] %s866_s6 }
  0x4e   : > { %s868_s7 = scalar_lea.vmem %s867_s6, 64  ;;  %p869_p12 = scmp.lt.s32.totalorder %s254_s14, %s867_s6 }
  0x4f   : > { %p864_p10 = pnand %p862_p4, %p818_p8  ;;  %p870_p13 = scmp.lt.s32.totalorder %s868_s7, %s861_s25 }
  0x51   : > { %p865_p2 = pneg %p864_p10  ;;  %p871_p5 = por %p870_p13, %p869_p12 }
  0x53   : > { %p872_p11 = pnand %p871_p5, %p865_p2 }
  0x55   : > { %875 = shalt.err (!%p872_p11)
}
  0x56   : > { %753 = dma.hbm_to_vmem [thread:$0]  (!%p1085_p6), %s1160_s11, 32, %s254_s14, %s1091_s13  }
  0x57   : > { %s876_s27 = scalar_lea.hbm %s1350_s0, 256  ;;  %p1373_p0 = scmp.ne.s32.totalorder %s1372_s16, 0 }
  0x58   : > { %p877_p8 = scmp.ne.s32.totalorder %s1350_s0, %s876_s27  ;;  %p883_p12 = scmp.lt.u32.totalorder %s876_s27, %s1350_s0 }
  0x59   : > { %p878_p4 = pneg %p1373_p0 }
  0x5b   : > { %p879_p7 = pnand %p878_p4, %p877_p8 }
  0x5d   : > { %p880_p9 = pneg %p879_p7 }
  0x5f   : > { %p885_p13 = pnand %p883_p12, %p880_p9 }
  0x61   : > { %888 = shalt.err (!%p885_p13)
}
  0x62   : > { %s889_s10 = scalar_lea.vmem %s1152_s29, 256  ;;  %p897_p10 = scmp.lt.s32.totalorder %s1152_s29, %s1152_s29 }
  0x63   : > { %p890_p6 = scmp.ne.s32.totalorder %s1152_s29, %s889_s10  ;;  %p898_p2 = scmp.lt.s32.totalorder %s889_s10, %s889_s10 }
  0x65   : > { %p892_p3 = pnand %p890_p6, %p878_p4  ;;  %p899_p5 = por %p898_p2, %p897_p10 }
  0x67   : > { %p893_p1 = pneg %p892_p3 }
  0x69   : > { %p900_p11 = pnand %p899_p5, %p893_p1 }
  0x6b   : > { %903 = shalt.err (!%p900_p11)
}
  0x6c   : > { %746 = dma.hbm_to_vmem [thread:$0]  (!%p1373_p0), %s1350_s0, 256, %s1152_s29, [#allocation3]  }
  0x6d   : > { %p1374_p8 = scmp.ne.s32.totalorder %s1370_s26, 0 }
  0x6e   : > { %p1375_p7 = scmp.eq.s32.totalorder (!%p1374_p8), %s1120_s15, 0 }
  0x6f   : > { %262 = sbr.rel (%p1374_p8) target bundleno = 591 (0x24f), region = 40 }
  0x76   : > { %957 = dma.done.wait (%p1375_p7), [#allocation3], 256   ;;  %p1376_p4 = pmov %p1375_p7 }
  0x77   : > { %s268_s11 = sand.u32 1, %s1120_s15   ;;  %s1217_s14 = sand.u32 1, %s974_s19  }
  0x78   : > { %959 = vsyncadd (%p1376_p4), [#allocation3], 4294967040  ;;  %s658_s16 = sshll.u32 %s1217_s14, 9  ;;  %s269_s6 = scalar_lea.sflag [#allocation6], %s268_s11 }
  0x79   : > { %s1220_s7 = scalar_lea.vmem [#allocation5], %s658_s16  ;;  %p1377_p0 = scmp.ne.s32.totalorder %s1367_s17, 0 }
  0x7b   : > { %961 = dma.done.wait (%p1377_p0), %s269_s6, 8224  }
  0x7c   : > { %963 = vsyncadd (%p1377_p0), %s269_s6, 4294959072  ;;  %v322_v0 = vld [vmem:[%s1220_s7 + $0x8] sm:$0xff]  ;;  %v324_v1 = vld [vmem:[%s1220_s7 + $0x18] sm:$0xff]  ;;  %s659_s15 = sshll.u32 %s1217_s14, 1  ;;  %s660_s1 = sshll.u32 %s1217_s14, 4 }
  0x7d   : > { %v321_v2 = vld [vmem:[%s1220_s7] sm:$0xff]  ;;  %v669_v3 = vpack.c.bf16 %v324_v1, %v322_v0  ;;  %v323_v4 = vld [vmem:[%s1220_s7 + $0x10] sm:$0xff]  ;;  %v326_v5 = vld [vmem:[%s1220_s7 + $0x28] sm:$0xff]  ;;  %s281_s17 = scalar_lea.vmem [#allocation7], %s659_s15  ;;  %s668_s8 = sshll.u32 %s982_s21, 8 }
  0x7e   : > { %v328_v6 = vld [vmem:[%s1220_s7 + $0x38] sm:$0xff]  ;;  %v671_v7 = vpack.c.bf16 %v323_v4, %v321_v2  ;;  %v325_v9 = vld [vmem:[%s1220_s7 + $0x20] sm:$0xff]  ;;  %v327_v10 = vld [vmem:[%s1220_s7 + $0x30] sm:$0xff]  ;;  %s312_s25 = scalar_lea.vmem [#allocation8], %s660_s1  ;;  %s1302_s13 = scalar_lea.hbm %s1355_s5, %s668_s8 }
  0x7f   : > { %v673_v8 = vpack.c.bf16 %v328_v6, %v326_v5  ;;  %v330_v11 = vld [vmem:[%s1220_s7 + $0x48] sm:$0xff]  ;;  %670 = vmatprep.subr.bf16.mxu0 %v669_v3  ;;  %v332_v12 = vld [vmem:[%s1220_s7 + $0x58] sm:$0xff]  ;;  %v675_v13 = vpack.c.bf16 %v327_v10, %v325_v9  ;;  %v329_v15 = vld [vmem:[%s1220_s7 + $0x40] sm:$0xff]  ;;  %s530_s28 = sshll.u32 %s312_s25, 4  ;;  %s514_s11 = scalar_lea.sflag [#allocation4], %s1217_s14  ;;  %s1304_s28 = int_to_ptr.vmem [resolvable:$true] %s530_s28 }
  0x80   : > { %672 = vmatpush1.bf16.msra.mxu0 %v671_v7  ;;  %v677_v14 = vpack.c.bf16 %v332_v12, %v330_v11  ;;  %v331_v16 = vld [vmem:[%s1220_s7 + $0x50] sm:$0xff]  ;;  %v334_v17 = vld [vmem:[%s1220_s7 + $0x68] sm:$0xff]  ;;  %v336_v18 = vld [vmem:[%s1220_s7 + $0x78] sm:$0xff]  ;;  %s904_s21 = scalar_lea.vmem %s1304_s28, 256  ;;  %p1378_p12 = scmp.ne.s32.totalorder %s1368_s9, 0 }
  0x81   : > { %674 = vmatprep.subr.bf16.mxu0 %v673_v8  ;;  %v679_v19 = vpack.c.bf16 %v331_v16, %v329_v15  ;;  %v681_v20 = vpack.c.bf16 %v336_v18, %v334_v17  ;;  %v333_v21 = vld [vmem:[%s1220_s7 + $0x60] sm:$0xff]  ;;  %v335_v22 = vld [vmem:[%s1220_s7 + $0x70] sm:$0xff]  ;;  %v338_v23 = vld [vmem:[%s1220_s7 + $0x88] sm:$0xff]  ;;  %p905_p9 = scmp.ne.s32.totalorder %s1304_s28, %s904_s21  ;;  %s998_s16 = smov [#allocation8]  }
  0x82   : > { %v340_v24 = vld [vmem:[%s1220_s7 + $0x98] sm:$0xff]  ;;  %v683_v25 = vpack.c.bf16 %v335_v22, %v333_v21  ;;  %v337_v27 = vld [vmem:[%s1220_s7 + $0x80] sm:$0xff]  ;;  %v339_v28 = vld [vmem:[%s1220_s7 + $0x90] sm:$0xff]  ;;  %s908_s6 = sshll.u32 %s998_s16, 4  ;;  %s909_s6 = int_to_ptr.vmem [resolvable:$false] %s908_s6 }
  0x83   : > { %v685_v26 = vpack.c.bf16 %v340_v24, %v338_v23  ;;  %v342_v29 = vld [vmem:[%s1220_s7 + $0xa8] sm:$0xff]  ;;  %v344_v30 = vld [vmem:[%s1220_s7 + $0xb8] sm:$0xff]  ;;  %v687_v31 = vpack.c.bf16 %v339_v28, %v337_v27  ;;  %v341_v33 = vld [vmem:[%s1220_s7 + $0xa0] sm:$0xff]  ;;  %p906_p13 = pnand %p905_p9, %p1378_p12  ;;  %p911_p3 = scmp.lt.s32.totalorder %s1304_s28, %s909_s6 }
  0x84   : > { %676 = vmatpush1.bf16.msra.mxu0 %v675_v13  ;;  %v689_v32 = vpack.c.bf16 %v344_v30, %v342_v29  ;;  %v343_v34 = vld [vmem:[%s1220_s7 + $0xb0] sm:$0xff]  ;;  %v346_v35 = vld [vmem:[%s1220_s7 + $0xc8] sm:$0xff]  ;;  %v348_v36 = vld [vmem:[%s1220_s7 + $0xd8] sm:$0xff] }
  0x85   : > { %678 = vmatprep.subr.bf16.mxu0 %v677_v14  ;;  %v691_v37 = vpack.c.bf16 %v343_v34, %v341_v33  ;;  %v693_v38 = vpack.c.bf16 %v348_v36, %v346_v35  ;;  %v345_v39 = vld [vmem:[%s1220_s7 + $0xc0] sm:$0xff]  ;;  %v347_v40 = vld [vmem:[%s1220_s7 + $0xd0] sm:$0xff]  ;;  %v317_v41 = vld [vmem:[#allocation2 + $0x8] sm:$0xff]  ;;  %v386_v34 = vlaneseq  ;;  %p907_p6 = pneg %p906_p13 }
  0x86   : > { %v350_v42 = vld [vmem:[%s1220_s7 + $0xe8] sm:$0xff]  ;;  %v352_v43 = vld [vmem:[%s1220_s7 + $0xf8] sm:$0xff]  ;;  %460 = vmatprep.mubr.f32.mxu0 %v317_v41  ;;  %v695_v44 = vpack.c.bf16 %v347_v40, %v345_v39  ;;  %v349_v46 = vld [vmem:[%s1220_s7 + $0xe0] sm:$0xff] }
  0x87   : > { %v697_v45 = vpack.c.bf16 %v352_v43, %v350_v42  ;;  %v351_v47 = vld [vmem:[%s1220_s7 + $0xf0] sm:$0xff]  ;;  %v354_v48 = vld [vmem:[%s1220_s7 + $0x108] sm:$0xff]  ;;  %v356_v49 = vld [vmem:[%s1220_s7 + $0x118] sm:$0xff]  ;;  %v387_v35 = vshrl.u32 %v386_v34, 7 }
  0x88   : > { %680 = vmatpush1.bf16.msra.mxu0 %v679_v19  ;;  %v699_v50 = vpack.c.bf16 %v351_v47, %v349_v46  ;;  %v701_v51 = vpack.c.bf16 %v356_v49, %v354_v48  ;;  %v353_v52 = vld [vmem:[%s1220_s7 + $0x100] sm:$0xff]  ;;  %v355_v53 = vld [vmem:[%s1220_s7 + $0x110] sm:$0xff]  ;;  %v358_v54 = vld [vmem:[%s1220_s7 + $0x128] sm:$0xff] }
  0x89   : > { %682 = vmatprep.subr.bf16.mxu0 %v681_v20  ;;  %v360_v55 = vld [vmem:[%s1220_s7 + $0x138] sm:$0xff]  ;;  %v703_v56 = vpack.c.bf16 %v355_v53, %v353_v52  ;;  %v357_v58 = vld [vmem:[%s1220_s7 + $0x120] sm:$0xff]  ;;  %v359_v59 = vld [vmem:[%s1220_s7 + $0x130] sm:$0xff]  ;;  %v388_v36 = vsub.s32 0, %v387_v35 }
  0x8a   : > { %v705_v57 = vpack.c.bf16 %v360_v55, %v358_v54  ;;  %v362_v60 = vld [vmem:[%s1220_s7 + $0x148] sm:$0xff]  ;;  %v364_v61 = vld [vmem:[%s1220_s7 + $0x158] sm:$0xff]  ;;  %v707_v62 = vpack.c.bf16 %v359_v59, %v357_v58  ;;  %v361_v0 = vld [vmem:[%s1220_s7 + $0x140] sm:$0xff] }
  0x8b   : > { %v709_v63 = vpack.c.bf16 %v364_v61, %v362_v60  ;;  %v363_v1 = vld [vmem:[%s1220_s7 + $0x150] sm:$0xff]  ;;  %v366_v2 = vld [vmem:[%s1220_s7 + $0x168] sm:$0xff]  ;;  %v368_v3 = vld [vmem:[%s1220_s7 + $0x178] sm:$0xff] }
  0x8c   : > { %684 = vmatpush1.bf16.msra.mxu0 %v683_v25  ;;  %v711_v4 = vpack.c.bf16 %v363_v1, %v361_v0  ;;  %v713_v5 = vpack.c.bf16 %v368_v3, %v366_v2  ;;  %v365_v6 = vld [vmem:[%s1220_s7 + $0x160] sm:$0xff]  ;;  %v367_v7 = vld [vmem:[%s1220_s7 + $0x170] sm:$0xff]  ;;  %v370_v8 = vld [vmem:[%s1220_s7 + $0x188] sm:$0xff] }
  0x8d   : > { %686 = vmatprep.subr.bf16.mxu0 %v685_v26  ;;  %v372_v9 = vld [vmem:[%s1220_s7 + $0x198] sm:$0xff]  ;;  %v715_v10 = vpack.c.bf16 %v367_v7, %v365_v6  ;;  %v369_v12 = vld [vmem:[%s1220_s7 + $0x180] sm:$0xff]  ;;  %v371_v13 = vld [vmem:[%s1220_s7 + $0x190] sm:$0xff] }
  0x8e   : > { %v717_v11 = vpack.c.bf16 %v372_v9, %v370_v8  ;;  %v374_v14 = vld [vmem:[%s1220_s7 + $0x1a8] sm:$0xff]  ;;  %v376_v15 = vld [vmem:[%s1220_s7 + $0x1b8] sm:$0xff]  ;;  %v719_v16 = vpack.c.bf16 %v371_v13, %v369_v12  ;;  %v373_v18 = vld [vmem:[%s1220_s7 + $0x1a0] sm:$0xff] }
  0x8f   : > { %v721_v17 = vpack.c.bf16 %v376_v15, %v374_v14  ;;  %v375_v19 = vld [vmem:[%s1220_s7 + $0x1b0] sm:$0xff]  ;;  %v378_v20 = vld [vmem:[%s1220_s7 + $0x1c8] sm:$0xff]  ;;  %v380_v21 = vld [vmem:[%s1220_s7 + $0x1d8] sm:$0xff] }
  0x90   : > { %688 = vmatpush1.bf16.msra.mxu0 %v687_v31  ;;  %v723_v22 = vpack.c.bf16 %v375_v19, %v373_v18  ;;  %v725_v23 = vpack.c.bf16 %v380_v21, %v378_v20  ;;  %v377_v24 = vld [vmem:[%s1220_s7 + $0x1c0] sm:$0xff]  ;;  %v379_v25 = vld [vmem:[%s1220_s7 + $0x1d0] sm:$0xff]  ;;  %v382_v26 = vld [vmem:[%s1220_s7 + $0x1e8] sm:$0xff] }
  0x91   : > { %690 = vmatprep.subr.bf16.mxu0 %v689_v32  ;;  %v384_v27 = vld [vmem:[%s1220_s7 + $0x1f8] sm:$0xff]  ;;  %v727_v28 = vpack.c.bf16 %v379_v25, %v377_v24  ;;  %v381_v30 = vld [vmem:[%s1220_s7 + $0x1e0] sm:$0xff]  ;;  %v383_v31 = vld [vmem:[%s1220_s7 + $0x1f0] sm:$0xff]  ;;  %s910_s7 = scalar_lea.vmem %s909_s6, 512 }
  0x92   : > { %v729_v29 = vpack.c.bf16 %v384_v27, %v382_v26  ;;  %v731_v32 = vpack.c.bf16 %v383_v31, %v381_v30  ;;  %v316_v33 = vld [vmem:[#allocation2] sm:$0xff]  ;;  %p912_p1 = scmp.lt.s32.totalorder %s910_s7, %s904_s21 }
  0x94   : > { %692 = vmatpush1.bf16.msra.mxu0 %v691_v37  ;;  %v318_v37 = vld [vmem:[%s281_s17] sm:$0x3]  ;;  %p913_p10 = por %p912_p1, %p911_p3 }
  0x95   : > { %694 = vmatprep.subr.bf16.mxu0 %v693_v38  ;;  %v392_v38 = vsub.s32 1, %v387_v35  ;;  %v389_v39 = vrot.slane %v318_v37, %v388_v36 }
  0x96   : > { %p914_p2 = pnand %p913_p10, %p907_p6 }
  0x97   : > { %v393_v40 = vrot.slane %v318_v37, %v392_v38 }
  0x98   : > { %696 = vmatpush1.bf16.msra.mxu0 %v695_v44 }
  0x99   : > { %698 = vmatprep.subr.bf16.mxu0 %v697_v45 }
  0x9c   : > { %700 = vmatpush1.bf16.msra.mxu0 %v699_v50 }
  0x9d   : > { %702 = vmatprep.subr.bf16.mxu0 %v701_v51 }
  0xa0   : > { %704 = vmatpush1.bf16.msra.mxu0 %v703_v56  ;;  %v319_v56 = vld [vmem:[%s1353_s3] sm:$0x3] }
  0xa1   : > { %706 = vmatprep.subr.bf16.mxu0 %v705_v57  ;;  %v320_v57 = vld [vmem:[%s1354_s4] sm:$0x3]  ;;  %v489_v58 = vrot.slane %v319_v56, %v388_v36  ;;  %v493_v59 = vrot.slane %v319_v56, %v392_v38 }
  0xa2   : > { %v506_v0 = vrot.slane %v320_v57, %v392_v38 }
  0xa4   : > { %708 = vmatpush1.bf16.msra.mxu0 %v707_v62 }
  0xa5   : > { %710 = vmatprep.subr.bf16.mxu0 %v709_v63  ;;  %v502_v63 = vrot.slane %v320_v57, %v388_v36 }
  0xa8   : > { %712 = vmatpush1.bf16.msra.mxu0 %v711_v4 }
  0xa9   : > { %714 = vmatprep.subr.bf16.mxu0 %v713_v5 }
  0xac   : > { %716 = vmatpush1.bf16.msra.mxu0 %v715_v10 }
  0xad   : > { %718 = vmatprep.subr.bf16.mxu0 %v717_v11 }
  0xb0   : > { %720 = vmatpush1.bf16.msra.mxu0 %v719_v16 }
  0xb1   : > { %722 = vmatprep.subr.bf16.mxu0 %v721_v17 }
  0xb4   : > { %724 = vmatpush1.bf16.msra.mxu0 %v723_v22 }
  0xb5   : > { %726 = vmatprep.subr.bf16.mxu0 %v725_v23 }
  0xb8   : > { %728 = vmatpush1.bf16.msra.mxu0 %v727_v28 }
  0xb9   : > { %730 = vmatprep.subr.bf16.mxu0 %v729_v29 }
  0xbc   : > { %732 = vmatpush1.bf16.msra.mxu0 %v731_v32 }
  0xbf   : > { %461 = vmatmul.mubr.f32.vlgmr.msra.gmra.mrb[0].mxu0 %v316_v33 }
 0x192   : > { %v462_v41 = vpop.f32.mrb[0].mxu0 }
 0x193   : > { %v463_v42 = vadd.f32 %v462_v41, %v389_v39  ;;  %v464_v43 = vpop.f32.mrb[1].mxu0 }
 0x194   : > { %v465_v44 = vadd.f32 %v464_v43, %v393_v40 }
 0x195   : > { %v470_v46 = vmul.f32 %v463_v42, %v463_v42 }
 0x196   : > { %v467_v45 = vadd.f32 %v465_v44, %v463_v42  ;;  %v471_v47 = vmul.f32 %v465_v44, %v465_v44 }
 0x198   : > { %468 = vadd.xlane.f32.xlu0 %v467_v45  ;;  %v472_v48 = vadd.f32 %v471_v47, %v470_v46 }
 0x19c   : > { %473 = vadd.xlane.f32.xlu0 %v472_v48 }
 0x225   : > { %v469_v49 = vpop.xlane.xlu0 %468 }
 0x226   : > { %v475_v50 = vmul.f32 0.00390625, %v469_v49 }
 0x228   : > { %v477_v52 = vmul.f32 %v475_v50, %v475_v50  ;;  %v479_v60 = vsub.f32 %v463_v42, %v475_v50  ;;  %v480_v61 = vsub.f32 %v465_v44, %v475_v50 }
 0x229   : > { %v474_v51 = vpop.xlane.xlu0 %473 }
 0x22a   : > { %v476_v53 = vmul.f32 0.00390625, %v474_v51 }
 0x22c   : > { %v478_v54 = vsub.f32 %v476_v53, %v477_v52 }
 0x22e   : > { %v481_v55 = vadd.f32 1e-05, %v478_v54 }
 0x230   : > { %814 = vrsqrt.f32 %v481_v55 }
 0x23a   : > { %v815_v62 = vpop.eup %814 }
 0x23b   : > { %v483_v1 = vmul.f32 %v815_v62, %v479_v60  ;;  %v484_v2 = vmul.f32 %v815_v62, %v480_v61 }
 0x23d   : > { %v496_v3 = vmul.f32 %v489_v58, %v483_v1  ;;  %v497_v4 = vmul.f32 %v493_v59, %v484_v2 }
 0x23f   : > { %v509_v5 = vadd.f32 %v502_v63, %v496_v3  ;;  %v510_v6 = vadd.f32 %v506_v0, %v497_v4 }
 0x241   : > { %511 = vst [vmem:[%s312_s25] sm:$0xff] %v509_v5  ;;  %512 = vst [vmem:[%s312_s25 + $0x8] sm:$0xff] %v510_v6 }
 0x242   : > { %917 = shalt.err (!%p914_p2)
}
 0x243   : > { %s918_s14 = scalar_lea.hbm %s1302_s13, 256  ;;  %s922_s26 = scalar_lea.hbm %s1355_s5, 1024 }
 0x244   : > { %p919_p5 = scmp.ne.s32.totalorder %s1302_s13, %s918_s14  ;;  %p923_p7 = scmp.lt.u32.totalorder %s1302_s13, %s1355_s5 }
 0x245   : > { %p924_p4 = scmp.lt.u32.totalorder %s922_s26, %s918_s14  ;;  %p926_p9 = scmp.lt.u32.totalorder %s918_s14, %s1302_s13 }
 0x246   : > { %p920_p11 = pnand %p919_p5, %p1378_p12 }
 0x247   : > { %p925_p0 = por %p924_p4, %p923_p7 }
 0x248   : > { %p921_p8 = pneg %p920_p11 }
 0x249   : > { %p927_p13 = por %p926_p9, %p925_p0 }
 0x24b   : > { %p928_p6 = pnand %p927_p13, %p921_p8 }
 0x24d   : > { %931 = shalt.err (!%p928_p6)
}
 0x24e   : > { %741 = dma.vmem_to_hbm [thread:$0]  (%p1378_p12), %s1304_s28, 256, %s1302_s13, %s514_s11  }
 0x24f PF: > { %p761_p3 = scmp.ge.s32.totalorder %s990_s23, 2  ;;  %s542_s24 = sand.u32 1, %s970_s18  }
 0x250   : > { %p1379_p1 = scmp.ne.s32.totalorder %s1369_s12, 0  ;;  %s543_s27 = scalar_lea.sflag [#allocation4], %s542_s24 }
 0x252   : > { %p755_p10 = pnand %p761_p3, %p1379_p1 }
 0x254   : > { %965 = dma.done.wait (!%p755_p10), %s543_s27, 256  }
 0x255   : > { %967 = vsyncadd (!%p755_p10), %s543_s27, 4294967040  ;;  %s22_s23 = sadd.s32 1, %s990_s23   ;;  %s1380_s9 = sld [smem:[#allocation12_spill]] }
 0x256   : > { %p19_p2 = scmp.ge.s32.totalorder %s22_s23, 6   ;;  %s1381_s18 = smov %s974_s19 }
 0x257   : > { %s1382_s19 = smov %s978_s20  ;;  %s1383_s20 = smov %s1076_s30 }
 0x258   : > { %s1384_s21 = smov %s986_s22  ;;  %21 = sbr.rel (!%p19_p2) target bundleno = 10 (0xa), region = 102 }
 0x25b   : > { %s1385_s22 = smov %s1380_s9 }
 0x25f   :  { %548 = vsyncpa [#allocation3], 1 }
 0x260   :  { %550 = vsyncpa [#allocation3 + $0x1], 1 }
 0x261   :  { %551 = vsyncpa [#allocation6], 1 }
 0x262   :  { %553 = vsyncpa [#allocation6 + $0x1], 1 }
 0x263   :  { %554 = vsyncpa [#allocation4], 1 }
 0x264   :  { %556 = vsyncpa [#allocation4 + $0x1], 1 }

</bundles_post_ra>
